<compile_context>
chip_gen: v6e
topology: v6e:2x2x1
jax: 0.10.0
libtpu: 0.0.40
codegen_flags: <defaults>
</compile_context>

<pallas_src>
import math

import jax
import jax.numpy as jnp
from jax import lax
from jax.experimental import pallas as pl
from jax.experimental.pallas import tpu as pltpu

LAYER_NORM_EPS = 1e-12  # BERT default config.layer_norm_eps
_MIB = 1024 * 1024


def _round_up(x, m):
    return (x + m - 1) // m * m


def _vmem_limit_bytes():
    """~85% of physical VMEM with >= 8 MiB headroom (v7x: 64 MiB, v5e/v6e: 128 MiB)."""
    cap = 64 * _MIB  # conservative fallback: works on every generation
    try:
        info = pltpu.get_tpu_info()
        cap_attr = int(getattr(info, "vmem_capacity_bytes", 0))
        if cap_attr > 0:
            cap = cap_attr
    except Exception:
        pass
    return max(32 * _MIB, min(int(0.85 * cap), cap - 8 * _MIB))


def _make_lm_head_kernel(vocab_axis, full_row_cache, eps):
    """Build the fused transform+decoder kernel for a given grid layout.

    vocab_axis: which grid axis indexes vocab tiles (must iterate sequentially).
    full_row_cache: True -> transform cache holds ALL row tiles (vocab-outer grid);
                    False -> cache holds only the current row tile (row-outer grid).
    """
    row_axis = 1 - vocab_axis

    def kernel(x_ref, w1_ref, b1_ref, g_ref, be_ref, w2_ref, b2_ref, o_ref, t_ref):
        j = pl.program_id(vocab_axis)                       # vocab tile (sequential!)
        i = pl.program_id(row_axis) if full_row_cache else 0

        # Transform (dense -> exact erf GELU -> LayerNorm), computed once per row tile
        # (on the first vocab tile) and cached in VMEM for all later vocab tiles.
        @pl.when(j == 0)
        def _transform():
            h = jnp.dot(x_ref[...], w1_ref[...], preferred_element_type=jnp.float32)
            h = h + b1_ref[...].astype(jnp.float32)
            # Exact (erf) GELU -- matches the reference PyTorch `gelu`.
            h = h * 0.5 * (1.0 + lax.erf(h * (1.0 / math.sqrt(2.0))))
            # LayerNorm: single centered pass, gamma folded into the rsqrt scale,
            # statistics in f32.
            mean = jnp.mean(h, axis=-1, keepdims=True)
            hc = h - mean
            var = jnp.mean(hc * hc, axis=-1, keepdims=True)
            scale = g_ref[...].astype(jnp.float32) * lax.rsqrt(var + eps)
            t = hc * scale + be_ref[...].astype(jnp.float32)
            t_ref[i] = t.astype(t_ref.dtype)

        # Decoder tile: (tm, H) @ (H, tv) on the MXU, f32 accumulate, + vocab bias tile.
        y = jnp.dot(t_ref[i], w2_ref[...], preferred_element_type=jnp.float32)
        y = y + b2_ref[...].astype(jnp.float32)
        o_ref[...] = y.astype(o_ref.dtype)

    return kernel


def make_bert_lm_head(dense_weight, dense_bias, ln_gamma, ln_beta,
                      embedding_weight, decoder_bias, *,
                      tm=None, tv=None, param_dtype=jnp.bfloat16,
                      out_dtype=None, layer_norm_eps=LAYER_NORM_EPS):
    """Prepare weights once and return a jitted forward(hidden_states) -> logits.

    dense_weight:     (H, H)  PyTorch nn.Linear layout (out, in)
    embedding_weight: (V, H)  tied decoder weight (PyTorch layout)
    decoder_bias:     (V,)
    param_dtype:      MXU operand dtype (default bf16; use jnp.float32 for exact parity)
    out_dtype:        logits dtype (default: dtype of hidden_states)
    """
    H = dense_weight.shape[0]
    V, H2 = embedding_weight.shape
    if H2 != H:
        raise ValueError("embedding_weight hidden dim mismatch")

    compute_dtype = jnp.dtype(param_dtype)
    isz = compute_dtype.itemsize
    vmem_limit = _vmem_limit_bytes()

    # --- row tile hint & vocab tile (lane-dense, per-generation default) ---
    tm_hint = int(tm) if tm is not None else 256
    if tv is None:
        tv_ = 2048 if vmem_limit < 60 * _MIB else 4096        # v7x vs v5e/v6e
        tv_ = min(tv_, _round_up(V, 128))

        def _tile_bytes(t):   # per-step VMEM footprint (out assumed f32 worst case)
            return (2 * tm_hint * H * isz + 2 * H * H * isz + 6 * H * 4
                    + 2 * H * t * isz + 2 * t * 4
                    + 2 * tm_hint * t * 4 + tm_hint * H * isz)

        while tv_ > 512 and _tile_bytes(tv_) > vmem_limit - 4 * _MIB:
            tv_ //= 2
        tv_ = _round_up(tv_, 128)
    else:
        tv_ = _round_up(min(int(tv), _round_up(V, 128)), 128)
    Vp = _round_up(V, tv_)

    # --- one-time weight layout prep (hoisted out of the per-call hot path) ---
    w1t = jnp.asarray(dense_weight).T.astype(compute_dtype)        # (H_in, H_out)
    b1 = jnp.asarray(dense_bias).reshape(1, H).astype(jnp.float32)
    g = jnp.asarray(ln_gamma).reshape(1, H).astype(jnp.float32)
    be = jnp.asarray(ln_beta).reshape(1, H).astype(jnp.float32)
    w2t = jnp.asarray(embedding_weight).T.astype(compute_dtype)    # (H, V)
    b2 = jnp.asarray(decoder_bias).reshape(1, V).astype(jnp.float32)
    if Vp != V:
        w2t = jnp.pad(w2t, ((0, 0), (0, Vp - V)))
        b2 = jnp.pad(b2, ((0, 0), (0, Vp - V)))

    row_align = 8 if isz >= 4 else 16   # sublane packing for sub-32-bit dtypes

    # TODO(synk): optional fp8 W2 for the decoder matmul on v7x (f32 accumulate) would
    # halve the dominant HBM stream again; left out to keep logits numerics tight.

    def forward(hidden_states):
        B, S, Hx = hidden_states.shape
        if Hx != H:
            raise ValueError("hidden_states last dim must equal hidden_size")
        N = B * S
        odt = jnp.dtype(out_dtype) if out_dtype is not None else jnp.dtype(hidden_states.dtype)
        osz = odt.itemsize

        tm_ = max(row_align, _round_up(min(tm_hint, _round_up(N, row_align)), row_align))
        Np = _round_up(N, tm_)
        n_row = Np // tm_
        n_voc = Vp // tv_

        x2d = hidden_states.reshape(N, H).astype(compute_dtype)
        if Np != N:
            x2d = jnp.pad(x2d, ((0, Np - N), (0, 0)))

        def footprint(full_cache):
            cache_rows = Np if full_cache else tm_
            return (2 * tm_ * H * isz        # x tile (double buffered)
                    + 2 * H * H * isz        # W1 (grid-invariant, still 2 buffers)
                    + 6 * H * 4              # b1 / gamma / beta
                    + 2 * H * tv_ * isz      # W2 vocab tile
                    + 2 * tv_ * 4            # vocab bias tile
                    + 2 * tm_ * tv_ * osz    # output tile
                    + cache_rows * H * isz)  # transform cache scratch

        # Prefer the vocab-outer grid with a full-N transform cache: W2 is then DMA'd
        # from HBM exactly once per call (decoder is HBM-bound, so this is the big win).
        full_cache = footprint(True) <= vmem_limit - 2 * _MIB

        if full_cache:
            grid = (n_voc, n_row)                         # vocab outer, rows inner
            # NOTE: the vocab axis MUST stay sequential -- the transform cache is
            # filled at vocab tile 0 and reused by all later vocab tiles.
            dim_sem = ("arbitrary", "arbitrary")
            x_map = lambda j, i: (i, 0)
            w2_map = lambda j, i: (0, j)                  # invariant over inner axis ->
            b2_map = lambda j, i: (0, j)                  # each W2 tile DMA'd once total
            o_map = lambda j, i: (i, j)
            cache_shape = (n_row, tm_, H)
            vocab_axis = 0
        else:
            grid = (n_row, n_voc)                         # rows outer, vocab inner
            dim_sem = ("parallel", "arbitrary")
            x_map = lambda i, j: (i, 0)
            w2_map = lambda i, j: (0, j)
            b2_map = lambda i, j: (0, j)
            o_map = lambda i, j: (i, j)
            cache_shape = (1, tm_, H)
            vocab_axis = 1

        const_map = lambda *_: (0, 0)
        kernel = _make_lm_head_kernel(vocab_axis, full_cache, layer_norm_eps)

        cost = pl.CostEstimate(
            flops=int(2 * N * H * (H + V)),
            transcendentals=int(N * H),
            bytes_accessed=int(N * H * isz + H * H * isz + H * Vp * isz + N * Vp * osz))

        out2d = pl.pallas_call(
            kernel,
            out_shape=jax.ShapeDtypeStruct((Np, Vp), odt),
            grid_spec=pltpu.PrefetchScalarGridSpec(
                num_scalar_prefetch=0,
                grid=grid,
                in_specs=[
                    pl.BlockSpec((tm_, H), x_map),     # x row tile
                    pl.BlockSpec((H, H), const_map),   # W1 (grid-invariant)
                    pl.BlockSpec((1, H), const_map),   # b1
                    pl.BlockSpec((1, H), const_map),   # gamma
                    pl.BlockSpec((1, H), const_map),   # beta
                    pl.BlockSpec((H, tv_), w2_map),    # W2 vocab tile
                    pl.BlockSpec((1, tv_), b2_map),    # vocab bias tile
                ],
                out_specs=pl.BlockSpec((tm_, tv_), o_map),
                scratch_shapes=[pltpu.VMEM(cache_shape, compute_dtype)],
            ),
            compiler_params=pltpu.CompilerParams(
                dimension_semantics=dim_sem,
                vmem_limit_bytes=int(vmem_limit)),
            cost_estimate=cost,
        )(x2d, w1t, b1, g, be, w2t, b2)

        return out2d[:N, :V].reshape(B, S, V)

    return jax.jit(forward)


def _reference(x, w1, b1, gamma, beta, w2, b2):
    h = jnp.einsum("bsh,oh->bso", x, w1) + b1
    h = h * 0.5 * (1.0 + lax.erf(h / math.sqrt(2.0)))
    mean = jnp.mean(h, axis=-1, keepdims=True)
    var = jnp.mean(jnp.square(h - mean), axis=-1, keepdims=True)
    h = (h - mean) / jnp.sqrt(var + LAYER_NORM_EPS)
    h = h * gamma + beta
    return jnp.einsum("bsh,vh->bsv", h, w2) + b2


if __name__ == "__main__":
    key = jax.random.PRNGKey(0)
    batch, seq, hidden, vocab = 2, 8, 32, 256

    ks = jax.random.split(key, 7)
    x = jax.random.normal(ks[0], (batch, seq, hidden), dtype=jnp.float32)
    dense_w = 0.02 * jax.random.normal(ks[1], (hidden, hidden), dtype=jnp.float32)
    dense_b = 0.02 * jax.random.normal(ks[2], (hidden,), dtype=jnp.float32)
    gamma = 1.0 + 0.1 * jax.random.normal(ks[3], (hidden,), dtype=jnp.float32)
    beta = 0.1 * jax.random.normal(ks[4], (hidden,), dtype=jnp.float32)
    emb_w = 0.02 * jax.random.normal(ks[5], (vocab, hidden), dtype=jnp.float32)
    # Module inits the vocab bias to zeros; use small random values to exercise the add.
    dec_b = 0.02 * jax.random.normal(ks[6], (vocab,), dtype=jnp.float32)

    ref = _reference(x, dense_w, dense_b, gamma, beta, emb_w, dec_b)

    # Exact-parity path: f32 MXU operands, tight tolerance.
    head_f32 = make_bert_lm_head(dense_w, dense_b, gamma, beta, emb_w, dec_b,
                                 param_dtype=jnp.float32)
    out_f32 = jax.block_until_ready(head_f32(x))
    assert out_f32.shape == (batch, seq, vocab)
    assert jnp.allclose(out_f32, ref, atol=1e-4, rtol=1e-4), "f32 mismatch vs reference"

    # Default fast path: bf16 MXU operands, f32 accumulate + f32 GELU/LayerNorm epilogue.
    head_bf16 = make_bert_lm_head(dense_w, dense_b, gamma, beta, emb_w, dec_b)
    out_bf16 = jax.block_until_ready(head_bf16(x))
    assert out_bf16.shape == (batch, seq, vocab)
    assert jnp.allclose(out_bf16.astype(jnp.float32), ref, atol=5e-2, rtol=5e-2), \
        "bf16 mismatch vs reference"

    print("KERNEL_OK")
</pallas_src>

<mosaic_0001>
module attributes {stable_mosaic.version = 11 : i64} {
  func.func @kernel(%arg0: i32, %arg1: i32, %arg2: memref<16x32xf32, #tpu.memory_space<vmem>>, %arg3: memref<32x32xf32, #tpu.memory_space<vmem>>, %arg4: memref<1x32xf32, #tpu.memory_space<vmem>>, %arg5: memref<1x32xf32, #tpu.memory_space<vmem>>, %arg6: memref<1x32xf32, #tpu.memory_space<vmem>>, %arg7: memref<32x256xf32, #tpu.memory_space<vmem>>, %arg8: memref<1x256xf32, #tpu.memory_space<vmem>>, %arg9: memref<16x256xf32, #tpu.memory_space<vmem>>, %arg10: memref<1x16x32xf32, #tpu.memory_space<vmem>>) attributes {dimension_semantics = [#tpu.dimension_semantics<arbitrary>, #tpu.dimension_semantics<arbitrary>], iteration_bounds = array<i64: 1, 1>, scalar_prefetch = 0 : i64, scratch_operands = 1 : i64, tpu.core_type = #tpu.core_type<tc>, window_params = [{transform_indices = @transform_0, window_bounds = array<i64: 16, 32>}, {pipeline_mode = #tpu.pipeline_mode<synchronous>, transform_indices = @transform_1, window_bounds = array<i64: 32, 32>}, {pipeline_mode = #tpu.pipeline_mode<synchronous>, transform_indices = @transform_2, window_bounds = array<i64: 1, 32>}, {pipeline_mode = #tpu.pipeline_mode<synchronous>, transform_indices = @transform_3, window_bounds = array<i64: 1, 32>}, {pipeline_mode = #tpu.pipeline_mode<synchronous>, transform_indices = @transform_4, window_bounds = array<i64: 1, 32>}, {transform_indices = @transform_5, window_bounds = array<i64: 32, 256>}, {transform_indices = @transform_6, window_bounds = array<i64: 1, 256>}, {transform_indices = @transform_7, window_bounds = array<i64: 16, 256>}]} {
    %c0_i32 = arith.constant 0 : i32
    %0 = arith.cmpi eq, %arg0, %c0_i32 : i32
    %1 = arith.extui %0 : i1 to i32
    %c0_i32_0 = arith.constant 0 : i32
    %2 = arith.cmpi ne, %1, %c0_i32_0 : i32
    scf.if %2 {
      %c0_8 = arith.constant 0 : index
      %c0_9 = arith.constant 0 : index
      %12 = vector.load %arg2[%c0_8, %c0_9] : memref<16x32xf32, #tpu.memory_space<vmem>>, vector<16x32xf32>
      %c0_10 = arith.constant 0 : index
      %c0_11 = arith.constant 0 : index
      %13 = vector.load %arg3[%c0_10, %c0_11] : memref<32x32xf32, #tpu.memory_space<vmem>>, vector<32x32xf32>
      %cst_12 = arith.constant dense<0.000000e+00> : vector<16x32xf32>
      %14 = tpu.matmul %12, %13, %cst_12 {dimension_numbers = #tpu.dot_dimension_numbers<[1], [0], [0], [1], [0, 0, 1, 1], [], []>} : vector<16x32xf32>, vector<32x32xf32>, vector<16x32xf32> -> vector<16x32xf32>
      %c0_13 = arith.constant 0 : index
      %c0_14 = arith.constant 0 : index
      %15 = vector.load %arg4[%c0_13, %c0_14] : memref<1x32xf32, #tpu.memory_space<vmem>>, vector<1x32xf32>
      %16 = vector.broadcast %15 : vector<1x32xf32> to vector<16x32xf32>
      %17 = arith.addf %14, %16 : vector<16x32xf32>
      %cst_15 = arith.constant 5.000000e-01 : f32
      %18 = vector.broadcast %cst_15 : f32 to vector<16x32xf32>
      %19 = arith.mulf %17, %18 : vector<16x32xf32>
      %cst_16 = arith.constant 0.707106769 : f32
      %20 = vector.broadcast %cst_16 : f32 to vector<16x32xf32>
      %21 = arith.mulf %17, %20 : vector<16x32xf32>
      %22 = math.erf %21 : vector<16x32xf32>
      %cst_17 = arith.constant 1.000000e+00 : f32
      %23 = vector.broadcast %cst_17 : f32 to vector<16x32xf32>
      %24 = arith.addf %23, %22 : vector<16x32xf32>
      %25 = arith.mulf %19, %24 : vector<16x32xf32>
      %cst_18 = arith.constant dense<0.000000e+00> : vector<16xf32>
      %26 = vector.multi_reduction <add>, %25, %cst_18 [1] : vector<16x32xf32> to vector<16xf32>
      %27 = vector.shape_cast %26 : vector<16xf32> to vector<16x1xf32>
      %cst_19 = arith.constant 3.200000e+01 : f32
      %28 = vector.broadcast %cst_19 : f32 to vector<16x1xf32>
      %29 = arith.divf %27, %28 : vector<16x1xf32>
      %30 = vector.broadcast %29 : vector<16x1xf32> to vector<16x32xf32>
      %31 = arith.subf %25, %30 : vector<16x32xf32>
      %32 = arith.mulf %31, %31 : vector<16x32xf32>
      %cst_20 = arith.constant dense<0.000000e+00> : vector<16xf32>
      %33 = vector.multi_reduction <add>, %32, %cst_20 [1] : vector<16x32xf32> to vector<16xf32>
      %34 = vector.shape_cast %33 : vector<16xf32> to vector<16x1xf32>
      %cst_21 = arith.constant 3.200000e+01 : f32
      %35 = vector.broadcast %cst_21 : f32 to vector<16x1xf32>
      %36 = arith.divf %34, %35 : vector<16x1xf32>
      %c0_22 = arith.constant 0 : index
      %c0_23 = arith.constant 0 : index
      %37 = vector.load %arg5[%c0_22, %c0_23] : memref<1x32xf32, #tpu.memory_space<vmem>>, vector<1x32xf32>
      %cst_24 = arith.constant 9.99999996E-13 : f32
      %38 = vector.broadcast %cst_24 : f32 to vector<16x1xf32>
      %39 = arith.addf %36, %38 : vector<16x1xf32>
      %40 = math.rsqrt %39 : vector<16x1xf32>
      %41 = vector.broadcast %37 : vector<1x32xf32> to vector<16x32xf32>
      %42 = vector.broadcast %40 : vector<16x1xf32> to vector<16x32xf32>
      %43 = arith.mulf %41, %42 : vector<16x32xf32>
      %44 = arith.mulf %31, %43 : vector<16x32xf32>
      %c0_25 = arith.constant 0 : index
      %c0_26 = arith.constant 0 : index
      %45 = vector.load %arg6[%c0_25, %c0_26] : memref<1x32xf32, #tpu.memory_space<vmem>>, vector<1x32xf32>
      %46 = vector.broadcast %45 : vector<1x32xf32> to vector<16x32xf32>
      %47 = arith.addf %44, %46 : vector<16x32xf32>
      %48 = arith.index_cast %arg1 : i32 to index
      %c0_27 = arith.constant 0 : index
      %c0_28 = arith.constant 0 : index
      %49 = vector.load %arg10[%48, %c0_27, %c0_28] : memref<1x16x32xf32, #tpu.memory_space<vmem>>, vector<1x16x32xf32>
      %50 = vector.shape_cast %49 : vector<1x16x32xf32> to vector<16x32xf32>
      %51 = vector.shape_cast %47 : vector<16x32xf32> to vector<1x16x32xf32>
      tpu.vector_store %arg10[%48, %c0_27, %c0_28], %51 {strides = array<i32>} : memref<1x16x32xf32, #tpu.memory_space<vmem>>, vector<1x16x32xf32>,
    } else {
    }
    %3 = arith.index_cast %arg1 : i32 to index
    %c0 = arith.constant 0 : index
    %c0_1 = arith.constant 0 : index
    %4 = vector.load %arg10[%3, %c0, %c0_1] : memref<1x16x32xf32, #tpu.memory_space<vmem>>, vector<1x16x32xf32>
    %5 = vector.shape_cast %4 : vector<1x16x32xf32> to vector<16x32xf32>
    %c0_2 = arith.constant 0 : index
    %c0_3 = arith.constant 0 : index
    %6 = vector.load %arg7[%c0_2, %c0_3] : memref<32x256xf32, #tpu.memory_space<vmem>>, vector<32x256xf32>
    %cst = arith.constant dense<0.000000e+00> : vector<16x256xf32>
    %7 = tpu.matmul %5, %6, %cst {dimension_numbers = #tpu.dot_dimension_numbers<[1], [0], [0], [1], [0, 0, 1, 1], [], []>} : vector<16x32xf32>, vector<32x256xf32>, vector<16x256xf32> -> vector<16x256xf32>
    %c0_4 = arith.constant 0 : index
    %c0_5 = arith.constant 0 : index
    %8 = vector.load %arg8[%c0_4, %c0_5] : memref<1x256xf32, #tpu.memory_space<vmem>>, vector<1x256xf32>
    %9 = vector.broadcast %8 : vector<1x256xf32> to vector<16x256xf32>
    %10 = arith.addf %7, %9 : vector<16x256xf32>
    %c0_6 = arith.constant 0 : index
    %c0_7 = arith.constant 0 : index
    %11 = vector.load %arg9[%c0_6, %c0_7] : memref<16x256xf32, #tpu.memory_space<vmem>>, vector<16x256xf32>
    tpu.vector_store %arg9[%c0_6, %c0_7], %10 {strides = array<i32>} : memref<16x256xf32, #tpu.memory_space<vmem>>, vector<16x256xf32>,
    return
  }
  func.func @transform_0(%arg0: i32, %arg1: i32) -> (i32, i32) {
    %c0_i32 = arith.constant 0 : i32
    %c0_i32_0 = arith.constant 0 : i32
    return %arg1, %c0_i32 : i32, i32
  }
  func.func @transform_1(%arg0: i32, %arg1: i32) -> (i32, i32) {
    %c0_i32 = arith.constant 0 : i32
    %c0_i32_0 = arith.constant 0 : i32
    %c0_i32_1 = arith.constant 0 : i32
    return %c0_i32, %c0_i32_0 : i32, i32
  }
  func.func @transform_2(%arg0: i32, %arg1: i32) -> (i32, i32) {
    %c0_i32 = arith.constant 0 : i32
    %c0_i32_0 = arith.constant 0 : i32
    %c0_i32_1 = arith.constant 0 : i32
    return %c0_i32, %c0_i32_0 : i32, i32
  }
  func.func @transform_3(%arg0: i32, %arg1: i32) -> (i32, i32) {
    %c0_i32 = arith.constant 0 : i32
    %c0_i32_0 = arith.constant 0 : i32
    %c0_i32_1 = arith.constant 0 : i32
    return %c0_i32, %c0_i32_0 : i32, i32
  }
  func.func @transform_4(%arg0: i32, %arg1: i32) -> (i32, i32) {
    %c0_i32 = arith.constant 0 : i32
    %c0_i32_0 = arith.constant 0 : i32
    %c0_i32_1 = arith.constant 0 : i32
    return %c0_i32, %c0_i32_0 : i32, i32
  }
  func.func @transform_5(%arg0: i32, %arg1: i32) -> (i32, i32) {
    %c0_i32 = arith.constant 0 : i32
    %c0_i32_0 = arith.constant 0 : i32
    return %c0_i32, %arg0 : i32, i32
  }
  func.func @transform_6(%arg0: i32, %arg1: i32) -> (i32, i32) {
    %c0_i32 = arith.constant 0 : i32
    %c0_i32_0 = arith.constant 0 : i32
    return %c0_i32, %arg0 : i32, i32
  }
  func.func @transform_7(%arg0: i32, %arg1: i32) -> (i32, i32) {
    %c0_i32 = arith.constant 0 : i32
    return %arg1, %arg0 : i32, i32
  }
}

</mosaic_0001>

<bundles_post_ra>
// kernel: forward.1
= control target key start
LH: loop header
LB: loop body
LE: loop exit
PB: predicated region body
PF: predicated region fallthrough
CT: control target
= control target key end

     0   :  { %12 = vsyncpa [#allocation4], 0  ;;  %s572_s0 = inlined_call_operand.hbm [shape: f32[16,32], index: 0, kind: input, shape index: {}]   ;;  %s573_s1 = inlined_call_operand.hbm [shape: f32[32,32], index: 1, kind: input, shape index: {}]   ;;  %s574_s2 = inlined_call_operand.vmem [shape: f32[1,32], index: 2, kind: input, shape index: {}]   ;;  %s575_s3 = inlined_call_operand.vmem [shape: f32[1,32], index: 3, kind: input, shape index: {}]   ;;  %s576_s4 = inlined_call_operand.vmem [shape: f32[1,32], index: 4, kind: input, shape index: {}]   ;;  %s577_s5 = inlined_call_operand.hbm [shape: f32[32,256], index: 5, kind: input, shape index: {}]   ;;  %s578_s6 = inlined_call_operand.vmem [shape: f32[1,256], index: 6, kind: input, shape index: {}]   ;;  %s579_s7 = inlined_call_operand.hbm [shape: f32[16,256], index: 7, kind: output, shape index: {}]  }
   0x1   :  { %13 = vsyncpa [#allocation7], 0 }
   0x2   :  { %14 = vsyncpa [#allocation5], 0  ;;  %s483_s24 = smov [#allocation6]   ;;  %s484_s26 = smov [#allocation3]  }
   0x3   :  { %s32_s25 = sshll.u32 %s483_s24, 4  ;;  %s20_s27 = sshll.u32 %s484_s26, 4  ;;  %s33_s25 = int_to_ptr.vmem [resolvable:$true] %s32_s25  ;;  %s21_s27 = int_to_ptr.vmem [resolvable:$true] %s20_s27 }
   0x4   :  { %s405_s28 = scalar_lea.vmem %s33_s25, 512  ;;  %p410_p1 = scmp.lt.s32.totalorder %s33_s25, %s33_s25 }
   0x5   :  { %p406_p0 = scmp.ne.s32.totalorder %s33_s25, %s405_s28  ;;  %p411_p2 = scmp.lt.s32.totalorder %s405_s28, %s405_s28 }
   0x7   :  { %p412_p3 = por %p411_p2, %p410_p1 }
   0x9   :  { %p413_p4 = pnand %p412_p3, %p406_p0 }
   0xb   :  { %416 = shalt.err (!%p413_p4)
}
   0xc   :  { %s485_s29 = smov 128   ;;  %s486_s30 = smov 8  }
   0xd   :  { %38 = dma.hbm_to_vmem [thread:$0]  %s573_s1, 512, %s33_s25, [#allocation7], %s485_s29, %s485_s29, %s486_s30  }
   0xe   :  { %s425_s10 = scalar_lea.vmem %s21_s27, 256  ;;  %p430_p6 = scmp.lt.s32.totalorder %s21_s27, %s21_s27 }
   0xf   :  { %p426_p5 = scmp.ne.s32.totalorder %s21_s27, %s425_s10  ;;  %p431_p7 = scmp.lt.s32.totalorder %s425_s10, %s425_s10 }
  0x11   :  { %p432_p8 = por %p431_p7, %p430_p6 }
  0x13   :  { %p433_p9 = pnand %p432_p8, %p426_p5 }
  0x15   :  { %436 = shalt.err (!%p433_p9)
}
  0x16   :  { %26 = dma.hbm_to_vmem [thread:$0]  %s572_s0, 256, %s21_s27, [#allocation4], %s485_s29, %s485_s29, %s486_s30  }
  0x17   :  { %s487_s13 = smov [#allocation8]  }
  0x18   :  { %s50_s14 = sshll.u32 %s487_s13, 4  ;;  %s51_s14 = int_to_ptr.vmem [resolvable:$true] %s50_s14 }
  0x19   :  { %s445_s15 = scalar_lea.vmem %s51_s14, 1024  ;;  %p450_p11 = scmp.lt.s32.totalorder %s51_s14, %s51_s14 }
  0x1a   :  { %p446_p10 = scmp.ne.s32.totalorder %s51_s14, %s445_s15  ;;  %p451_p12 = scmp.lt.s32.totalorder %s445_s15, %s445_s15 }
  0x1c   :  { %p452_p13 = por %p451_p12, %p450_p11 }
  0x1e   :  { %p453_p0 = pnand %p452_p13, %p446_p10 }
  0x20   :  { %456 = shalt.err (!%p453_p0)
}
  0x21   :  { %s488_s1 = smov 256   ;;  %s489_s16 = smov 16  }
  0x22   :  { %56 = dma.hbm_to_vmem [thread:$0]  %s577_s5, 1024, %s51_s14, [#allocation7], %s488_s1, %s488_s1, %s489_s16  }
  0x23   :  { %477 = dma.done.wait [#allocation4], 256  }
  0x24   :  { %478 = vsyncadd [#allocation4], 4294967040 }
  0x25   :  { %479 = dma.done.wait [#allocation7], 1536  }
  0x26   :  { %480 = vsyncadd [#allocation7], 4294965760  ;;  %vm85_vm0 = vcmask 261120   ;;  %v77_v0 = vld [vmem:[#allocation6 + $0x18] sm:$0xff]  ;;  %v76_v1 = vld [vmem:[#allocation6 + $0x10] sm:$0xff]  ;;  %v490_v41 = vmov 0.0   ;;  %v240_v60 = vlaneseq }
  0x27   :  { %369 = vmatprep.subr.mxu0 %v77_v0  ;;  %v72_v2 = vld [vmem:[#allocation3] sm:$0xff]  ;;  %v75_v3 = vld [vmem:[#allocation6 + $0x8] sm:$0xff]  ;;  %v74_v4 = vld [vmem:[#allocation6] sm:$0xff]  ;;  %321 = vmatprep.mubr.f32.mxu1 %v490_v41  ;;  %s491_s22 = smov [#allocation9]  }
  0x28   :  { %370 = vmatpush3.msra.mxu0 %v77_v0  ;;  %377 = vmatprep.mubr.msk.f32.mxu0 %vm85_vm0, %v72_v2  ;;  %v73_v5 = vld [vmem:[#allocation3 + $0x8] sm:$0xff]  ;;  %v356_v6 = vld [vmem:[%s574_s2] ss:$0 sm:$0xff]  ;;  %v236_v34 = vld [vmem:[#allocation8 + $0x30] sm:$0xff]  ;;  %v241_v61 = vshrl.u32 %v240_v60, 7  ;;  %s343_s23 = sshll.u32 %s491_s22, 4  ;;  %s344_s23 = int_to_ptr.vmem [resolvable:$true] %s343_s23 }
  0x29   :  { %371 = vmatprep.subr.mxu0 %v76_v1  ;;  %v237_v33 = vld [vmem:[#allocation8 + $0x38] sm:$0xff]  ;;  %v235_v35 = vld [vmem:[#allocation8 + $0x28] sm:$0xff]  ;;  %v234_v36 = vld [vmem:[#allocation8 + $0x20] sm:$0xff]  ;;  %s457_s24 = scalar_lea.vmem %s344_s23, 512  ;;  %p462_p2 = scmp.lt.s32.totalorder %s344_s23, %s344_s23 }
  0x2a   :  { %372 = vmatpush3.msra.mxu0 %v76_v1  ;;  %281 = vmatprep.subr.mxu1 %v237_v33  ;;  %v233_v37 = vld [vmem:[#allocation8 + $0x18] sm:$0xff]  ;;  %v232_v38 = vld [vmem:[#allocation8 + $0x10] sm:$0xff]  ;;  %v231_v39 = vld [vmem:[#allocation8 + $0x8] sm:$0xff]  ;;  %v242_v62 = vsub.s32 0, %v241_v61  ;;  %v246_v0 = vsub.s32 1, %v241_v61  ;;  %p458_p1 = scmp.ne.s32.totalorder %s344_s23, %s457_s24  ;;  %p463_p3 = scmp.lt.s32.totalorder %s457_s24, %s457_s24 }
  0x2b   :  { %373 = vmatprep.subr.mxu0 %v75_v3  ;;  %282 = vmatpush1.msra.mxu1 %v236_v34  ;;  %v230_v40 = vld [vmem:[#allocation8] sm:$0xff] }
  0x2c   :  { %374 = vmatpush3.msra.mxu0 %v75_v3  ;;  %283 = vmatprep.subr.mxu1 %v235_v35  ;;  %v359_v48 = vld [vmem:[%s575_s3] ss:$0 sm:$0xff]  ;;  %p464_p4 = por %p463_p3, %p462_p2 }
  0x2d   :  { %375 = vmatprep.subr.mxu0 %v74_v4  ;;  %284 = vmatpush1.msra.mxu1 %v234_v36  ;;  %v360_v51 = vld [vmem:[%s576_s4] ss:$0 sm:$0xff] }
  0x2e   :  { %376 = vmatpush3.msra.mxu0 %v74_v4  ;;  %285 = vmatprep.subr.mxu1 %v233_v37  ;;  %v238_v63 = vld [vmem:[%s578_s6] sm:$0x3]  ;;  %p465_p5 = pnand %p464_p4, %p458_p1 }
  0x2f   :  { %378 = vmatmul.mubr.msk.f32.vlgmr.msra.gmra.mxu0 %vm85_vm0, %v73_v5  ;;  %286 = vmatpush1.msra.mxu1 %v232_v38  ;;  %v243_v1 = vrot.slane %v238_v63, %v242_v62  ;;  %v247_v2 = vrot.slane %v238_v63, %v246_v0 }
  0x30   :  { %287 = vmatprep.subr.mxu1 %v231_v39 }
  0x31   :  { %288 = vmatpush1.msra.mxu1 %v230_v40 }
  0xef   :  { %v379_v7 = vpop.f32.mrf.mxu0 }
  0xf0   :  { %v164_v8 = vadd.f32 %v379_v7, %v356_v6 }
  0xf1   :  { %v158_v9 = vpop.f32.mrf.mxu0 }
  0xf2   :  { %v170_v10 = vmul.f32 0.70710677, %v164_v8  ;;  %v159_v11 = vadd.f32 %v356_v6, %v158_v9  ;;  %v168_v18 = vmul.f32 0.5, %v164_v8 }
  0xf4   :  { %389 = verf.f32 %v170_v10  ;;  %v169_v12 = vmul.f32 0.70710677, %v159_v11  ;;  %v167_v15 = vmul.f32 0.5, %v159_v11 }
  0xf6   :  { %391 = verf.f32 %v169_v12 }
 0x101   :  { %v390_v13 = vpop.eup %389 }
 0x102   :  { %v174_v17 = vadd.f32 1.0, %v390_v13 }
 0x103   :  { %v392_v14 = vpop.eup %391 }
 0x104   :  { %v173_v16 = vadd.f32 1.0, %v392_v14  ;;  %v176_v21 = vmul.f32 %v174_v17, %v168_v18 }
 0x106   :  { %v175_v19 = vmul.f32 %v173_v16, %v167_v15  ;;  %v180_v22 = vsel %vm85_vm0, %v176_v21, 0.0 }
 0x108   :  { %v177_v20 = vsel %vm85_vm0, %v175_v19, 0.0 }
 0x109   :  { %178 = vadd.xlane.f32.xlu0 %v177_v20 }
 0x10d   :  { %181 = vadd.xlane.f32.xlu0 %v180_v22 }
 0x192   :  { %v179_v23 = vpop.xlane.xlu0 %178 }
 0x193   :  { %v184_v24 = vmul.f32 0.03125, %v179_v23 }
 0x195   :  { %v186_v25 = vsub.f32 %v175_v19, %v184_v24 }
 0x196   :  { %v182_v26 = vpop.xlane.xlu0 %181 }
 0x197   :  { %v185_v27 = vmul.f32 0.03125, %v182_v26  ;;  %v188_v28 = vmul.f32 %v186_v25, %v186_v25 }
 0x199   :  { %v187_v29 = vsub.f32 %v176_v21, %v185_v27  ;;  %v190_v30 = vsel %vm85_vm0, %v188_v28, 0.0 }
 0x19a   :  { %191 = vadd.xlane.f32.xlu1 %v190_v30 }
 0x19b   :  { %v189_v31 = vmul.f32 %v187_v29, %v187_v29 }
 0x19d   :  { %v193_v32 = vsel %vm85_vm0, %v189_v31, 0.0 }
 0x19e   :  { %194 = vadd.xlane.f32.xlu1 %v193_v32 }
 0x223   :  { %v192_v42 = vpop.xlane.xlu1 %191 }
 0x224   :  { %v196_v43 = vmul.f32 0.03125, %v192_v42 }
 0x226   :  { %v199_v44 = vadd.f32 1e-12, %v196_v43 }
 0x227   :  { %v195_v45 = vpop.xlane.xlu1 %194 }
 0x228   :  { %393 = vrsqrt.f32 %v199_v44  ;;  %v197_v46 = vmul.f32 0.03125, %v195_v45 }
 0x22a   :  { %v200_v47 = vadd.f32 1e-12, %v197_v46 }
 0x22c   :  { %395 = vrsqrt.f32 %v200_v47 }
 0x235   :  { %v394_v49 = vpop.eup %393 }
 0x236   :  { %v209_v50 = vmul.f32 %v394_v49, %v359_v48 }
 0x238   :  { %v211_v52 = vmul.f32 %v209_v50, %v186_v25 }
 0x239   :  { %v396_v53 = vpop.eup %395 }
 0x23a   :  { %v220_v54 = vadd.f32 %v360_v51, %v211_v52  ;;  %v210_v55 = vmul.f32 %v396_v53, %v359_v48 }
 0x23c   :  { %224 = vst.msk [vmem:[#allocation2] sm:$0xff] %vm85_vm0, %v220_v54  ;;  %v212_v56 = vmul.f32 %v210_v55, %v187_v29 }
 0x23e   :  { %v221_v57 = vadd.f32 %v360_v51, %v212_v56 }
 0x240   :  { %225 = vst.msk [vmem:[#allocation2 + $0x8] sm:$0xff] %vm85_vm0, %v221_v57 }
 0x243   :  { %v228_v58 = vld [vmem:[#allocation2] sm:$0xff] }
 0x244   :  { %361 = vmatmul.mubr.msk.f32.vlgmr.msra.gmra.mxu1 %vm85_vm0, %v228_v58 }
 0x245   :  { %327 = vmatprep.mubr.f32.mxu1 %v490_v41 }
 0x247   :  { %v229_v59 = vld [vmem:[#allocation2 + $0x8] sm:$0xff] }
 0x248   :  { %362 = vmatmul.mubr.msk.f32.gmra.mxu1 %vm85_vm0, %v229_v59 }
 0x304   :  { %v323_v3 = vpop.f32.mrf.mxu1 }
 0x305   :  { %v324_v4 = vadd.f32 %v323_v3, %v243_v1 }
 0x306   :  { %v325_v5 = vpop.f32.mrf.mxu1 }
 0x307   :  { %334 = vst [vmem:[#allocation9] sm:$0xff] %v324_v4  ;;  %v326_v6 = vadd.f32 %v325_v5, %v247_v2 }
 0x308   :  { %v329_v7 = vpop.f32.mrf.mxu1 }
 0x309   :  { %335 = vst [vmem:[#allocation9 + $0x8] sm:$0xff] %v326_v6  ;;  %v330_v8 = vadd.f32 %v329_v7, %v243_v1 }
 0x30a   :  { %v331_v9 = vpop.f32.mrf.mxu1 }
 0x30b   :  { %336 = vst [vmem:[#allocation9 + $0x10] sm:$0xff] %v330_v8  ;;  %v332_v10 = vadd.f32 %v331_v9, %v247_v2 }
 0x30d   :  { %337 = vst [vmem:[#allocation9 + $0x18] sm:$0xff] %v332_v10 }
 0x30e   :  { %468 = shalt.err (!%p465_p5)
}
 0x30f   :  { %349 = dma.vmem_to_hbm [thread:$0]  %s344_s23, 512, %s579_s7, [#allocation5], %s488_s1, %s488_s1, %s489_s16  }
 0x310   :  { %481 = dma.done.wait [#allocation5], 512  }
 0x311   :  { %482 = vsyncadd [#allocation5], 4294966784 }
 0x312   :  { %353 = vsyncpa [#allocation4], 1 }
 0x313   :  { %354 = vsyncpa [#allocation7], 1 }
 0x314   :  { %355 = vsyncpa [#allocation5], 1 }

</bundles_post_ra>
